<compile_context>
chip_gen: v7x
topology: tpu7x:2x2x1
jax: 0.10.0
libtpu: 0.0.40
codegen_flags: <defaults>
</compile_context>

<pallas_src>
import functools

import jax
import jax.numpy as jnp
from jax.experimental import pallas as pl
from jax.experimental.pallas import tpu as pltpu


# ----------------------------------------------------------------------------
# Pallas kernel: dense channel-mixing matmul on a (B_TILE, Cin, T) tile
# ----------------------------------------------------------------------------
def _sgs_kernel(x_ref, w_ref, o_ref):
    """x_ref: (B_TILE, Cin, T)  spatial-on-lanes activation tile
       w_ref: (Cout, Cin)       folded dense weight (sum of 3 block-diag convs)
       o_ref: (B_TILE, Cout, T)
    """
    w = w_ref[...]
    # B_TILE is a small static constant -> unrolled; each iteration is a clean
    # 2-D matmul with the lane axis untouched (no in-kernel transpose).
    for b in range(x_ref.shape[0]):
        o_ref[b] = jnp.dot(
            w, x_ref[b], preferred_element_type=jnp.float32
        ).astype(o_ref.dtype)


# ----------------------------------------------------------------------------
# Tiling selection (VMEM-budget driven, keeps >=2 parallel steps for v7x)
# ----------------------------------------------------------------------------
_VMEM_BUDGET_BYTES = 24 * 1024 * 1024   # conservative: fits every generation


def _live_bytes(b_tile, hw_tile, cin, cout, itemsize):
    # double-buffered activation + output blocks, single-buffered weight
    return 2 * b_tile * hw_tile * (cin + cout) * itemsize + cout * cin * itemsize


def _choose_tiling(n, cin, cout, hw_pad, itemsize, budget=_VMEM_BUDGET_BYTES):
    """Pick (b_tile, hw_tile): largest blocks fitting the VMEM budget."""
    # lane-aligned spatial tiles dividing hw_pad, largest first
    hw_cands = [t for t in range(hw_pad, 0, -128)
                if t % 128 == 0 and hw_pad % t == 0] or [hw_pad]
    b_cands = [b for b in range(n, 0, -1) if n % b == 0]

    b_tile, hw_tile = 1, hw_cands[-1]
    found = False
    for b in b_cands:                       # prefer folding the whole batch
        for t in hw_cands:                  # then the largest spatial tile
            if _live_bytes(b, t, cin, cout, itemsize) <= budget:
                b_tile, hw_tile, found = b, t, True
                break
        if found:
            break

    # Keep at least 2 grid steps so v7x's two TensorCores both get work.
    steps = (n // b_tile) * (hw_pad // hw_tile)
    if steps == 1:
        if hw_tile % 2 == 0 and (hw_tile // 2) % 128 == 0:
            hw_tile //= 2
        elif b_tile % 2 == 0:
            b_tile //= 2
    return b_tile, hw_tile


def _weight_spec(cout, cin):
    """Weight is grid-invariant -> request a single VMEM buffer if supported."""
    idx = lambda n, t: (0, 0)
    try:
        return pl.BlockSpec((cout, cin), idx, pipeline_mode=pl.Buffered(1))
    except (TypeError, AttributeError):     # older jax: fall back to default
        return pl.BlockSpec((cout, cin), idx)


# ----------------------------------------------------------------------------
# Forward wrapper
# ----------------------------------------------------------------------------
def soft_grouping_forward(q_nchw, w_dense, *, io_dtype=None):
    """q_nchw: (N, Cin, H, W);  w_dense: (Cout, Cin) folded weight.

    io_dtype: optionally cast activations/weight (e.g. jnp.bfloat16) at the
    kernel boundary to halve HBM traffic; accumulation stays f32.
    """
    N, Cin, H, W = q_nchw.shape
    Cout, Cin_w = w_dense.shape
    assert Cin_w == Cin, (Cin_w, Cin)

    HW = H * W
    HW_pad = ((HW + 127) // 128) * 128      # lane-align the spatial axis
    x = q_nchw.reshape(N, Cin, HW)
    w = w_dense
    if io_dtype is not None:
        x = x.astype(io_dtype)
        w = w.astype(io_dtype)
    if HW_pad != HW:
        x = jnp.pad(x, ((0, 0), (0, 0), (0, HW_pad - HW)))

    out_dtype = x.dtype
    itemsize = jnp.dtype(out_dtype).itemsize
    b_tile, hw_tile = _choose_tiling(N, Cin, Cout, HW_pad, itemsize)

    est_live = _live_bytes(b_tile, hw_tile, Cin, Cout, itemsize)
    # Explicit scoped-VMEM limit: at least the (small) v5e default, never more
    # than 32 MiB so v7x's 64 MiB physical VMEM keeps plenty of headroom.
    vmem_limit = int(min(max(2 * est_live, 16 * 1024 * 1024), 32 * 1024 * 1024))

    cost = pl.CostEstimate(
        flops=2 * N * Cout * Cin * HW,
        transcendentals=0,
        bytes_accessed=itemsize * N * HW * (Cin + Cout) + itemsize * Cout * Cin,
    )

    out = pl.pallas_call(
        _sgs_kernel,
        out_shape=jax.ShapeDtypeStruct((N, Cout, HW_pad), out_dtype),
        grid=(N // b_tile, HW_pad // hw_tile),
        in_specs=[
            pl.BlockSpec((b_tile, Cin, hw_tile), lambda n, t: (n, 0, t)),
            _weight_spec(Cout, Cin),
        ],
        out_specs=pl.BlockSpec((b_tile, Cout, hw_tile), lambda n, t: (n, 0, t)),
        compiler_params=pltpu.CompilerParams(
            dimension_semantics=("parallel", "parallel"),
            vmem_limit_bytes=vmem_limit,
        ),
        cost_estimate=cost,
    )(x, w)

    if HW_pad != HW:
        out = out[..., :HW]
    return out.reshape(N, Cout, H, W)


# ----------------------------------------------------------------------------
# Weight construction / folding (mirrors nn.Conv2d(..., groups=g, bias=False))
# ----------------------------------------------------------------------------
def _grouped_weight_to_dense(w_g, groups, cin):
    """w_g: (Cout, Cin//groups, 1, 1) grouped conv weight -> dense (Cout, Cin)."""
    cout = w_g.shape[0]
    assert cin % groups == 0, (cin, groups)
    assert cout % groups == 0, (cout, groups)
    cin_g = cin // groups
    assert w_g.shape[1] == cin_g, (w_g.shape, cin_g)
    cout_g = cout // groups
    w2 = w_g.reshape(cout, cin_g)
    dense = jnp.zeros((cout, cin), w_g.dtype)
    for g in range(groups):
        dense = dense.at[g * cout_g:(g + 1) * cout_g,
                         g * cin_g:(g + 1) * cin_g].set(
                             w2[g * cout_g:(g + 1) * cout_g])
    return dense


def init_soft_grouping_params(key, in_channel, out_channel, N_groups):
    """Returns (list of grouped weights OIHW, folded dense weight)."""
    assert len(N_groups) == 3
    ks = jax.random.split(key, 3)
    ws = []
    for k, g in zip(ks, N_groups):
        assert in_channel % g == 0 and out_channel % g == 0, (in_channel,
                                                              out_channel, g)
        fan_in = (in_channel // g) * 1 * 1
        std = 1.0 / jnp.sqrt(jnp.float32(fan_in))
        w = jax.random.normal(
            k, (out_channel, in_channel // g, 1, 1), jnp.float32) * std
        ws.append(w)
    # Fold: sum of three block-diagonal channel matrices -> one dense matrix.
    w_dense = sum(_grouped_weight_to_dense(w, g, in_channel)
                  for w, g in zip(ws, N_groups))
    return ws, w_dense


# ----------------------------------------------------------------------------
# Pure-JAX reference (three grouped 1x1 convs, summed) for correctness check
# ----------------------------------------------------------------------------
def soft_grouping_ref(q_nchw, grouped_weights, N_groups):
    outs = []
    for w, g in zip(grouped_weights, N_groups):
        y = jax.lax.conv_general_dilated(
            q_nchw, w, window_strides=(1, 1), padding="VALID",
            dimension_numbers=("NCHW", "OIHW", "NCHW"),
            feature_group_count=g,
            preferred_element_type=jnp.float32)
        outs.append(y)
    return outs[0] + outs[1] + outs[2]


if __name__ == "__main__":
    batch, in_channel, out_channel = 2, 4, 4
    H = W = 16
    N_groups = (1, 2, 4)          # groups for the three 1x1 convs

    key = jax.random.PRNGKey(0)
    k_w, k_x = jax.random.split(key)
    grouped_ws, w_dense = init_soft_grouping_params(
        k_w, in_channel, out_channel, N_groups)

    q = jax.random.normal(k_x, (batch, in_channel, H, W), jnp.float32)

    fwd = jax.jit(functools.partial(soft_grouping_forward, w_dense=w_dense))
    out = jax.block_until_ready(fwd(q))

    ref = jax.block_until_ready(soft_grouping_ref(q, grouped_ws, N_groups))
    assert out.shape == (batch, out_channel, H, W), out.shape
    assert jnp.allclose(out, ref, atol=1e-5, rtol=1e-5), float(
        jnp.max(jnp.abs(out - ref)))

    print("KERNEL_OK")
</pallas_src>

<mosaic_0001>
module attributes {stable_mosaic.version = 11 : i64} {
  func.func @_sgs_kernel(%arg0: i32, %arg1: i32, %arg2: memref<2x4x128xf32, #tpu.memory_space<vmem>>, %arg3: memref<4x4xf32, #tpu.memory_space<vmem>>, %arg4: memref<2x4x128xf32, #tpu.memory_space<vmem>>) attributes {dimension_semantics = [#tpu.dimension_semantics<parallel>, #tpu.dimension_semantics<parallel>], iteration_bounds = array<i64: 1, 2>, scalar_prefetch = 0 : i64, scratch_operands = 0 : i64, tpu.core_type = #tpu.core_type<tc>, window_params = [{transform_indices = @transform_0, window_bounds = array<i64: 2, 4, 128>}, {pipeline_mode = #tpu.pipeline_mode<synchronous>, transform_indices = @transform_1, window_bounds = array<i64: 4, 4>}, {transform_indices = @transform_2, window_bounds = array<i64: 2, 4, 128>}]} {
    %c0 = arith.constant 0 : index
    %c0_0 = arith.constant 0 : index
    %0 = vector.load %arg3[%c0, %c0_0] : memref<4x4xf32, #tpu.memory_space<vmem>>, vector<4x4xf32>
    %c0_1 = arith.constant 0 : index
    %c0_2 = arith.constant 0 : index
    %c0_3 = arith.constant 0 : index
    %1 = vector.load %arg2[%c0_1, %c0_2, %c0_3] : memref<2x4x128xf32, #tpu.memory_space<vmem>>, vector<1x4x128xf32>
    %2 = vector.shape_cast %1 : vector<1x4x128xf32> to vector<4x128xf32>
    %cst = arith.constant dense<0.000000e+00> : vector<4x128xf32>
    %3 = tpu.matmul %0, %2, %cst {dimension_numbers = #tpu.dot_dimension_numbers<[1], [0], [0], [1], [0, 0, 1, 1], [], []>} : vector<4x4xf32>, vector<4x128xf32>, vector<4x128xf32> -> vector<4x128xf32>
    %c0_4 = arith.constant 0 : index
    %c0_5 = arith.constant 0 : index
    %c0_6 = arith.constant 0 : index
    %4 = vector.load %arg4[%c0_4, %c0_5, %c0_6] : memref<2x4x128xf32, #tpu.memory_space<vmem>>, vector<1x4x128xf32>
    %5 = vector.shape_cast %4 : vector<1x4x128xf32> to vector<4x128xf32>
    %6 = vector.shape_cast %3 : vector<4x128xf32> to vector<1x4x128xf32>
    tpu.vector_store %arg4[%c0_4, %c0_5, %c0_6], %6 {strides = array<i32>} : memref<2x4x128xf32, #tpu.memory_space<vmem>>, vector<1x4x128xf32>,
    %c1 = arith.constant 1 : index
    %c0_7 = arith.constant 0 : index
    %c0_8 = arith.constant 0 : index
    %7 = vector.load %arg2[%c1, %c0_7, %c0_8] : memref<2x4x128xf32, #tpu.memory_space<vmem>>, vector<1x4x128xf32>
    %8 = vector.shape_cast %7 : vector<1x4x128xf32> to vector<4x128xf32>
    %cst_9 = arith.constant dense<0.000000e+00> : vector<4x128xf32>
    %9 = tpu.matmul %0, %8, %cst_9 {dimension_numbers = #tpu.dot_dimension_numbers<[1], [0], [0], [1], [0, 0, 1, 1], [], []>} : vector<4x4xf32>, vector<4x128xf32>, vector<4x128xf32> -> vector<4x128xf32>
    %c1_10 = arith.constant 1 : index
    %c0_11 = arith.constant 0 : index
    %c0_12 = arith.constant 0 : index
    %10 = vector.load %arg4[%c1_10, %c0_11, %c0_12] : memref<2x4x128xf32, #tpu.memory_space<vmem>>, vector<1x4x128xf32>
    %11 = vector.shape_cast %10 : vector<1x4x128xf32> to vector<4x128xf32>
    %12 = vector.shape_cast %9 : vector<4x128xf32> to vector<1x4x128xf32>
    tpu.vector_store %arg4[%c1_10, %c0_11, %c0_12], %12 {strides = array<i32>} : memref<2x4x128xf32, #tpu.memory_space<vmem>>, vector<1x4x128xf32>,
    return
  }
  func.func @transform_0(%arg0: i32, %arg1: i32) -> (i32, i32, i32) {
    %c0_i32 = arith.constant 0 : i32
    %c0_i32_0 = arith.constant 0 : i32
    return %arg0, %c0_i32, %arg1 : i32, i32, i32
  }
  func.func @transform_1(%arg0: i32, %arg1: i32) -> (i32, i32) {
    %c0_i32 = arith.constant 0 : i32
    %c0_i32_0 = arith.constant 0 : i32
    %c0_i32_1 = arith.constant 0 : i32
    return %c0_i32, %c0_i32_0 : i32, i32
  }
  func.func @transform_2(%arg0: i32, %arg1: i32) -> (i32, i32, i32) {
    %c0_i32 = arith.constant 0 : i32
    %c0_i32_0 = arith.constant 0 : i32
    return %arg0, %c0_i32, %arg1 : i32, i32, i32
  }
}

</mosaic_0001>

<bundles_post_ra>
// kernel: soft_grouping_forward.1
= control target key start
LH: loop header
LB: loop body
LE: loop exit
PB: predicated region body
PF: predicated region fallthrough
CT: control target
= control target key end

     0   :  { %s618_s9 = smov 0   ;;  %s620_s10 = smov 0   ;;  %s693_s0 = inlined_call_operand.vmem [shape: f32[2,4,256], index: 0, kind: input, shape index: {}]   ;;  %s694_s1 = inlined_call_operand.vmem [shape: f32[4,4], index: 1, kind: input, shape index: {}]   ;;  %s695_s2 = inlined_call_operand.vmem [shape: f32[2,4,256], index: 2, kind: output, shape index: {}]  }
   0x1   :  { %s622_s11 = smov 0   ;;  %s624_s12 = smov 0  }
   0x2   :  { %s626_s13 = smov 0  }
   0x3 LB: > { %s21_s14 = sadd.s32 1, %s595_s12  ;;  %s486_s15 = sadd.s32 4294967295, %s599_s13   ;;  %s599_s13 = sphi %s626_s13, %s12_s13   ;;  %s595_s12 = sphi %s624_s12, %s700_s12   ;;  %s591_s11 = sphi %s622_s11, %s699_s11   ;;  %s587_s10 = sphi %s620_s10, %s698_s10   ;;  %s583_s9 = sphi %s618_s9, %s697_s9  }
   0x4   : > { %p22_p0 = scmp.ge.s32.totalorder %s21_s14, 2  ;;  %p40_p1 = scmp.ne.s32.totalorder %s587_s10, %s583_s9 }
   0x5   : > { %p41_p2 = scmp.eq.s32.totalorder %s599_s13, 0  ;;  %p93_p4 = scmp.eq.s32.totalorder %s486_s15, 1 }
   0x6   : > { %s702_s14 = smov (%p22_p0, %s21_s14), 0  ;;  %s33_s17 = sadd.s32 1, %s587_s10 }
   0x7   : > { %p42_p3 = por %p41_p2, %p40_p1  ;;  %s29_s16 = ssub.s32 %s595_s12, %s702_s14 }
   0x8   : > { %p31_p5 = scmp.eq.s32.totalorder %s29_s16, 0  ;;  %p653_p6 = por %p93_p4, %p40_p1 }
   0x9   : > { %p489_p7 = scmp.ge.s32.totalorder %s599_s13, 2 }
   0xa   : > { %s658_s19 = scalar_select %p31_p5, %s587_s10, %s33_s17  }
   0xb   : > { %118 = sbr.rel (%p489_p7) target bundleno = 25 (0x19), region = 20 }
  0x12   : > { %121 = sbr.rel (!%p42_p3) target bundleno = 25 (0x19), region = 24  ;;  %s123_s20 = sand.u32 (%p42_p3), 1, %s587_s10  }
  0x13   : > { %s491_s21 = sshll.u32 (%p42_p3), %s595_s12, 2  ;;  %s490_s22 = sshll.u32 (%p42_p3), %s123_s20, 3 }
  0x14   : > { %s130_s25 = scalar_lea.vmem (%p42_p3), %s693_s0, %s491_s21  ;;  %s125_s26 = scalar_lea.vmem (%p42_p3), [#allocation2], %s490_s22 }
  0x15   : > { %v146_v0 = vld [vmem:[%s130_s25] sm:$0xf] (%p42_p3)  ;;  %v148_v1 = vld [vmem:[%s130_s25 + $0x8] sm:$0xf] (%p42_p3) }
  0x16   : > { %147 = vst [vmem:[%s125_s26] sm:$0xf] (%p42_p3), %v146_v0  ;;  %149 = vst [vmem:[%s125_s26 + $0x4] sm:$0xf] (%p42_p3), %v148_v1 }
  0x19 PF: > { %p492_p8 = scmp.ge.s32.totalorder %s599_s13, 1  ;;  %p175_p9 = scmp.lt.s32.totalorder %s599_s13, 3 }
  0x1b   : > { %p176_p10 = pnand %p492_p8, %p175_p9 }
  0x1c   : > { %s182_s27 = sand.u32 (!%p176_p10), 1, %s583_s9   ;;  %v601_v2 = vmov (!%p176_p10), 0.0   ;;  %vm210_vm0 = vcmask (!%p176_p10), 1043456   ;;  %vm602_vm1 = vmmov (!%p176_p10), 0   ;;  %v204_v3 = vld [vmem:[%s694_s1] sm:$0xf] (!%p176_p10) }
  0x1d   : > { %179 = sbr.rel (%p176_p10) target bundleno = 254 (0xfe), region = 65  ;;  %509 = vmatprep.subr.mxu0 (!%p176_p10), %v601_v2  ;;  %514 = vmatprep.subr.mxu1 (!%p176_p10), %v601_v2  ;;  %s493_s28 = sshll.u32 (!%p176_p10), %s182_s27, 3  ;;  %vm206_vm2 = vcmask (!%p176_p10), 31744  }
  0x1e   : > { %511 = vmatprep.mubr.msk.f32.mxu0 (!%p176_p10), %vm602_vm1, %v601_v2  ;;  %516 = vmatprep.mubr.msk.f32.mxu1 (!%p176_p10), %vm602_vm1, %v601_v2  ;;  %s184_s3 = scalar_lea.vmem (!%p176_p10), [#allocation2], %s493_s28  ;;  %s201_s4 = scalar_lea.vmem (!%p176_p10), [#allocation3], %s493_s28 }
  0x1f   : > { %v205_v4 = vld [vmem:[%s184_s3] sm:$0xf] (!%p176_p10)  ;;  %v497_v5 = vld [vmem:[%s184_s3 + $0x4] sm:$0xf] (!%p176_p10) }
  0x20   : > { %510 = vmatpush3.msk.msra.mxu0 (!%p176_p10), %vm210_vm0, %v205_v4  ;;  %515 = vmatpush3.msk.msra.mxu1 (!%p176_p10), %vm210_vm0, %v497_v5 }
  0x21   : > { %512 = vmatmul.mubr.msk.f32.vlgmr.msra.gmra.mrb[0].mxu0 (!%p176_p10), %vm206_vm2, %v204_v3  ;;  %517 = vmatmul.mubr.msk.f32.vlgmr.msra.gmra.mrb[0].mxu1 (!%p176_p10), %vm206_vm2, %v204_v3 }
  0x24   : > { %s502_s5 = sshll.u32 (%p653_p6), %s591_s11, 2 }
  0x25   : > { %s373_s8 = scalar_lea.vmem (%p653_p6), %s695_s2, %s502_s5 }
  0xef   : > { %368 = sbr.rel (!%p653_p6) target bundleno = 254 (0xfe), region = 73 }
  0xf4   : > { %v280_v6 = vpop.f32.mrb[0].mxu0  ;;  %v356_v7 = vpop.f32.mrb[0].mxu1 }
  0xf5   : > { %284 = vst [vmem:[%s201_s4] sm:$0xf] %v280_v6  ;;  %500 = vst [vmem:[%s201_s4 + $0x4] sm:$0xf] %v356_v7  ;;  %v513_v8 = vpop.f32.mrb[1].mxu0  ;;  %v518_v9 = vpop.f32.mrb[1].mxu1 }
  0xfc   : > { %v389_v10 = vld [vmem:[%s201_s4] sm:$0xf]  ;;  %v391_v11 = vld [vmem:[%s201_s4 + $0x4] sm:$0xf] }
  0xfd   : > { %390 = vst [vmem:[%s373_s8] sm:$0xf] %v389_v10  ;;  %392 = vst [vmem:[%s373_s8 + $0x8] sm:$0xf] %v391_v11 }
  0xfe PF: > { %s12_s13 = sadd.s32 1, %s599_s13   ;;  %s697_s9 = smov %s587_s10 }
  0xff   : > { %p9_p11 = scmp.ge.s32.totalorder %s12_s13, 4   ;;  %s698_s10 = smov %s658_s19 }
 0x100   : > { %s699_s11 = smov %s595_s12  ;;  %s700_s12 = smov %s702_s14 }
 0x101   :  { %11 = sbr.rel (!%p9_p11) target bundleno = 3 (0x3), region = 147 }

</bundles_post_ra>
